<compile_context>
chip_gen: v7x
topology: tpu7x:2x2x1
jax: 0.10.0
libtpu: 0.0.40
codegen_flags: <defaults>
</compile_context>

<pallas_src>
import functools
import math

import jax
import jax.numpy as jnp
from jax.experimental import pallas as pl
from jax.experimental.pallas import tpu as pltpu


def transformer_layer_kernel(
    x_ref,
    wqkv_ref, bqkv_ref,
    wo_ref, bo_ref,
    w1_ref, b1_ref,
    w2_ref, b2_ref,
    g1_ref, be1_ref,
    g2_ref, be2_ref,
    o_ref,
    *, num_heads, exp_dtype,
):
    xb = x_ref[...]                                  # (Bb, S, H) f32
    Bb, S, H = xb.shape
    hd = H // num_heads
    rows = Bb * S
    scale = 1.0 / math.sqrt(hd)

    # Flatten batch*seq -> one tall M dimension for the MXU.
    x = xb.reshape(rows, H)
    x_bf = x.astype(jnp.bfloat16)

    # --- fused QKV projection: single MXU op, bf16 inputs, f32 accumulation ---
    qkv = jnp.dot(x_bf, wqkv_ref[...], preferred_element_type=jnp.float32)
    qkv = qkv + bqkv_ref[0]                          # (rows, 3H) f32
    q = qkv[:, 0 * H:1 * H] * scale                  # fold 1/sqrt(hd) into q once
    k = qkv[:, 1 * H:2 * H]
    v = qkv[:, 2 * H:3 * H]

    def heads(t):
        # bf16 BEFORE the relayout -> half the XLU / store traffic.
        # (rows, H) -> (Bb*num_heads, S, hd)
        return (t.astype(jnp.bfloat16)
                 .reshape(Bb, S, num_heads, hd)
                 .transpose(0, 2, 1, 3)
                 .reshape(Bb * num_heads, S, hd))

    qh, kh, vh = heads(q), heads(k), heads(v)

    # --- batched multi-head attention; explicit contracting dims (no K transpose) ---
    s = jnp.einsum('hqd,hkd->hqk', qh, kh, preferred_element_type=jnp.float32)
    s = s - jnp.max(s, axis=-1, keepdims=True)       # softmax stats in f32
    p = jnp.exp(s.astype(exp_dtype))                 # bf16 exp on v6e/v7x, f32 on v5e
    denom = jnp.sum(p.astype(jnp.float32), axis=-1, keepdims=True)   # >= 1

    ctx = jnp.einsum('hqk,hkd->hqd', p.astype(jnp.bfloat16), vh,
                     preferred_element_type=jnp.float32)
    # Normalize after P@V: reciprocal on (S, hd) instead of (S, S); EUP approx recip.
    ctx = ctx * pl.reciprocal(denom, approx=True)

    # Head merge in bf16, then output projection.
    ctx_bf = (ctx.astype(jnp.bfloat16)
                 .reshape(Bb, num_heads, S, hd)
                 .transpose(0, 2, 1, 3)
                 .reshape(rows, H))
    attn_out = jnp.dot(ctx_bf, wo_ref[...],
                       preferred_element_type=jnp.float32) + bo_ref[0]

    def layer_norm(y, gamma, beta, eps=1e-5):        # f32 statistics, PyTorch eps
        mu = jnp.mean(y, axis=-1, keepdims=True)
        var = jnp.mean((y - mu) ** 2, axis=-1, keepdims=True)
        return (y - mu) * jax.lax.rsqrt(var + eps) * gamma + beta

    # --- residual + norm1 ---
    h1 = layer_norm(x + attn_out, g1_ref[0], be1_ref[0])

    # --- feed-forward: Linear -> ReLU -> Linear (bf16 MXU inputs, f32 accumulate) ---
    ff = jnp.dot(h1.astype(jnp.bfloat16), w1_ref[...],
                 preferred_element_type=jnp.float32) + b1_ref[0]
    ff = jnp.maximum(ff, 0.0)
    ff = jnp.dot(ff.astype(jnp.bfloat16), w2_ref[...],
                 preferred_element_type=jnp.float32) + b2_ref[0]

    # --- residual + norm2 ---
    h2 = layer_norm(h1 + ff, g2_ref[0], be2_ref[0])
    o_ref[...] = h2.reshape(Bb, S, H).astype(o_ref.dtype)


def _pick_block_b(B, S, target_rows=256):
    """Largest divisor of B with block_b*S <= target_rows, keeping >=2 grid steps."""
    divisors = [d for d in range(1, B + 1) if B % d == 0]
    fitting = [d for d in divisors if d * S <= max(target_rows, S)]
    block_b = max(fitting) if fitting else 1
    # Keep at least 2 "parallel" grid steps when B >= 2 so v7x megacore has work.
    while block_b > 1 and B // block_b < 2:
        block_b = max(d for d in divisors if d < block_b)
    return block_b


def _softmax_exp_dtype():
    """bf16 EUP exists on v6e/v7x; keep f32 exp on v5e and older generations."""
    try:
        kind = jax.devices()[0].device_kind.lower()
    except Exception:
        return jnp.float32
    if any(t in kind for t in ("v2", "v3", "v4", "v5")):
        return jnp.float32
    return jnp.bfloat16


def transformer_layer(x, params, num_heads):
    B, S, H = x.shape
    ff_dim = params["w1"].shape[1]

    block_b = _pick_block_b(B, S)
    nb = B // block_b
    rows = block_b * S

    kernel = functools.partial(transformer_layer_kernel,
                               num_heads=num_heads,
                               exp_dtype=_softmax_exp_dtype())

    def weight_spec(shape):
        # Constant block index across the batch grid: fetch once, single-buffered.
        return pl.BlockSpec(shape, lambda b: (0,) * len(shape),
                            pipeline_mode=pl.Buffered(1))

    in_specs = [
        pl.BlockSpec((block_b, S, H), lambda b: (b, 0, 0)),            # x
        weight_spec((H, 3 * H)), weight_spec((1, 3 * H)),              # fused wqkv / bqkv
        weight_spec((H, H)), weight_spec((1, H)),                      # wo / bo
        weight_spec((H, ff_dim)), weight_spec((1, ff_dim)),            # w1 / b1
        weight_spec((ff_dim, H)), weight_spec((1, H)),                 # w2 / b2
        weight_spec((1, H)), weight_spec((1, H)),                      # norm1 gamma / beta
        weight_spec((1, H)), weight_spec((1, H)),                      # norm2 gamma / beta
    ]
    out_spec = pl.BlockSpec((block_b, S, H), lambda b: (b, 0, 0))

    # --- VMEM budget (no double counting):
    #     weights are single-buffered (Buffered(1)); x / out blocks are double-buffered
    #     by the pipeline; activations counted once (f32 + the bf16 relayout copies).
    weight_bytes = 2 * (H * 3 * H + H * H + 2 * H * ff_dim)             # bf16, x1
    small_bytes = 4 * (3 * H + H + ff_dim + H + 4 * H)                  # f32 vectors, x1
    block_bytes = 4 * rows * H                                          # one f32 block
    act_f32 = 4 * (rows * 3 * H + num_heads * block_b * S * S
                   + rows * ff_dim + 4 * rows * H)
    act_bf16 = 2 * (rows * 3 * H + num_heads * block_b * S * S + rows * H)
    footprint = (weight_bytes + small_bytes
                 + 2 * 2 * block_bytes                                  # x + out, double-buffered
                 + act_f32 + act_bf16)

    try:
        vmem_cap = pltpu.get_tpu_info().vmem_capacity_bytes
    except Exception:  # pragma: no cover - conservative fallback
        vmem_cap = 64 * 1024 * 1024
    # Generation-aware limit: headroom over the real footprint, capped at ~85% of capacity.
    vmem_limit = int(min(0.85 * vmem_cap, max(2 * footprint, 32 * 1024 * 1024)))

    # --- cost hint for XLA scheduling around the custom call ---
    flops = 2 * B * S * (4 * H * H + 2 * S * H + 2 * H * ff_dim)
    transcendentals = B * num_heads * S * S + 2 * B * S
    bytes_accessed = 4 * 2 * B * S * H + weight_bytes + small_bytes
    cost = pl.CostEstimate(flops=flops, transcendentals=transcendentals,
                           bytes_accessed=bytes_accessed)

    return pl.pallas_call(
        kernel,
        grid=(nb,),
        in_specs=in_specs,
        out_specs=out_spec,
        out_shape=jax.ShapeDtypeStruct((B, S, H), jnp.float32),
        compiler_params=pltpu.CompilerParams(
            dimension_semantics=("parallel",),
            vmem_limit_bytes=vmem_limit,
        ),
        cost_estimate=cost,
    )(
        x,
        params["wqkv"], params["bqkv"],
        params["wo"], params["bo"],
        params["w1"], params["b1"],
        params["w2"], params["b2"],
        params["g1"], params["be1"],
        params["g2"], params["be2"],
    )


def init_params(key, hidden, ff_dim):
    ks = jax.random.split(key, 8)
    std = 0.02
    f32 = jnp.float32
    bf16 = jnp.bfloat16

    # attention projections, (in, out) layout so the kernel does x @ W + b
    wq = jax.random.normal(ks[0], (hidden, hidden), f32) * std
    wk = jax.random.normal(ks[1], (hidden, hidden), f32) * std
    wv = jax.random.normal(ks[2], (hidden, hidden), f32) * std

    params = {
        # fused QKV (matches nn.MultiheadAttention's fused in_proj); bf16 MXU weights
        "wqkv": jnp.concatenate([wq, wk, wv], axis=1).astype(bf16),
        "bqkv": jnp.zeros((1, 3 * hidden), f32),
        "wo": (jax.random.normal(ks[3], (hidden, hidden), f32) * std).astype(bf16),
        "bo": jnp.zeros((1, hidden), f32),
        # feed-forward
        "w1": (jax.random.normal(ks[4], (hidden, ff_dim), f32) * std).astype(bf16),
        "b1": jnp.zeros((1, ff_dim), f32),
        "w2": (jax.random.normal(ks[5], (ff_dim, hidden), f32) * std).astype(bf16),
        "b2": jnp.zeros((1, hidden), f32),
        # layer norms (PyTorch default init: gamma=1, beta=0), kept f32
        "g1": jnp.ones((1, hidden), f32),
        "be1": jnp.zeros((1, hidden), f32),
        "g2": jnp.ones((1, hidden), f32),
        "be2": jnp.zeros((1, hidden), f32),
    }
    return params


if __name__ == "__main__":
    batch, seq, hidden, num_heads, ff_dim = 2, 8, 32, 4, 64

    key = jax.random.PRNGKey(0)
    kx, kp = jax.random.split(key)
    x = jax.random.normal(kx, (batch, seq, hidden), jnp.float32)
    params = init_params(kp, hidden, ff_dim)

    out = transformer_layer(x, params, num_heads)
    out = jax.block_until_ready(out)
    assert out.shape == (batch, seq, hidden)
    assert jnp.all(jnp.isfinite(out))
    print("KERNEL_OK")
</pallas_src>

<mosaic_0001>
module attributes {stable_mosaic.version = 11 : i64} {
  func.func @transformer_layer_kernel(%arg0: i32, %arg1: memref<1x8x32xf32, #tpu.memory_space<vmem>>, %arg2: memref<32x96xbf16, #tpu.memory_space<vmem>>, %arg3: memref<1x96xf32, #tpu.memory_space<vmem>>, %arg4: memref<32x32xbf16, #tpu.memory_space<vmem>>, %arg5: memref<1x32xf32, #tpu.memory_space<vmem>>, %arg6: memref<32x64xbf16, #tpu.memory_space<vmem>>, %arg7: memref<1x64xf32, #tpu.memory_space<vmem>>, %arg8: memref<64x32xbf16, #tpu.memory_space<vmem>>, %arg9: memref<1x32xf32, #tpu.memory_space<vmem>>, %arg10: memref<1x32xf32, #tpu.memory_space<vmem>>, %arg11: memref<1x32xf32, #tpu.memory_space<vmem>>, %arg12: memref<1x32xf32, #tpu.memory_space<vmem>>, %arg13: memref<1x32xf32, #tpu.memory_space<vmem>>, %arg14: memref<1x8x32xf32, #tpu.memory_space<vmem>>) attributes {dimension_semantics = [#tpu.dimension_semantics<parallel>], iteration_bounds = array<i64: 2>, scalar_prefetch = 0 : i64, scratch_operands = 0 : i64, tpu.core_type = #tpu.core_type<tc>, window_params = [{transform_indices = @transform_0, window_bounds = array<i64: 1, 8, 32>}, {pipeline_mode = #tpu.pipeline_mode<synchronous>, transform_indices = @transform_1, window_bounds = array<i64: 32, 96>}, {pipeline_mode = #tpu.pipeline_mode<synchronous>, transform_indices = @transform_2, window_bounds = array<i64: 1, 96>}, {pipeline_mode = #tpu.pipeline_mode<synchronous>, transform_indices = @transform_3, window_bounds = array<i64: 32, 32>}, {pipeline_mode = #tpu.pipeline_mode<synchronous>, transform_indices = @transform_4, window_bounds = array<i64: 1, 32>}, {pipeline_mode = #tpu.pipeline_mode<synchronous>, transform_indices = @transform_5, window_bounds = array<i64: 32, 64>}, {pipeline_mode = #tpu.pipeline_mode<synchronous>, transform_indices = @transform_6, window_bounds = array<i64: 1, 64>}, {pipeline_mode = #tpu.pipeline_mode<synchronous>, transform_indices = @transform_7, window_bounds = array<i64: 64, 32>}, {pipeline_mode = #tpu.pipeline_mode<synchronous>, transform_indices = @transform_8, window_bounds = array<i64: 1, 32>}, {pipeline_mode = #tpu.pipeline_mode<synchronous>, transform_indices = @transform_9, window_bounds = array<i64: 1, 32>}, {pipeline_mode = #tpu.pipeline_mode<synchronous>, transform_indices = @transform_10, window_bounds = array<i64: 1, 32>}, {pipeline_mode = #tpu.pipeline_mode<synchronous>, transform_indices = @transform_11, window_bounds = array<i64: 1, 32>}, {pipeline_mode = #tpu.pipeline_mode<synchronous>, transform_indices = @transform_12, window_bounds = array<i64: 1, 32>}, {transform_indices = @transform_13, window_bounds = array<i64: 1, 8, 32>}]} {
    %c0 = arith.constant 0 : index
    %c0_0 = arith.constant 0 : index
    %c0_1 = arith.constant 0 : index
    %0 = vector.load %arg1[%c0, %c0_0, %c0_1] : memref<1x8x32xf32, #tpu.memory_space<vmem>>, vector<1x8x32xf32>
    %1 = vector.shape_cast %0 : vector<1x8x32xf32> to vector<8x32xf32>
    %2 = arith.truncf %1 : vector<8x32xf32> to vector<8x32xbf16>
    %c0_2 = arith.constant 0 : index
    %c0_3 = arith.constant 0 : index
    %3 = vector.load %arg2[%c0_2, %c0_3] : memref<32x96xbf16, #tpu.memory_space<vmem>>, vector<32x96xbf16>
    %cst = arith.constant dense<0.000000e+00> : vector<8x96xf32>
    %4 = tpu.matmul %2, %3, %cst {dimension_numbers = #tpu.dot_dimension_numbers<[1], [0], [0], [1], [0, 0, 1, 1], [], []>} : vector<8x32xbf16>, vector<32x96xbf16>, vector<8x96xf32> -> vector<8x96xf32>
    %c0_4 = arith.constant 0 : index
    %c0_5 = arith.constant 0 : index
    %5 = vector.load %arg3[%c0_4, %c0_5] : memref<1x96xf32, #tpu.memory_space<vmem>>, vector<1x96xf32>
    %6 = vector.shape_cast %5 : vector<1x96xf32> to vector<96xf32>
    %7 = vector.shape_cast %6 : vector<96xf32> to vector<1x96xf32>
    %8 = vector.broadcast %7 : vector<1x96xf32> to vector<8x96xf32>
    %9 = arith.addf %4, %8 : vector<8x96xf32>
    %10 = vector.extract_strided_slice %9 {offsets = [0, 0], sizes = [8, 32], strides = [1, 1]} : vector<8x96xf32> to vector<8x32xf32>
    %cst_6 = arith.constant 0.353553385 : f32
    %11 = vector.broadcast %cst_6 : f32 to vector<8x32xf32>
    %12 = arith.mulf %10, %11 : vector<8x32xf32>
    %13 = vector.extract_strided_slice %9 {offsets = [0, 32], sizes = [8, 32], strides = [1, 1]} : vector<8x96xf32> to vector<8x32xf32>
    %14 = vector.extract_strided_slice %9 {offsets = [0, 64], sizes = [8, 32], strides = [1, 1]} : vector<8x96xf32> to vector<8x32xf32>
    %15 = arith.truncf %12 : vector<8x32xf32> to vector<8x32xbf16>
    %16 = vector.shape_cast %15 : vector<8x32xbf16> to vector<1x8x4x8xbf16>
    %17 = tpu.transpose %16, [0, 2, 1, 3] : vector<1x8x4x8xbf16> -> vector<1x4x8x8xbf16>
    %18 = vector.shape_cast %17 : vector<1x4x8x8xbf16> to vector<4x8x8xbf16>
    %19 = arith.truncf %13 : vector<8x32xf32> to vector<8x32xbf16>
    %20 = vector.shape_cast %19 : vector<8x32xbf16> to vector<1x8x4x8xbf16>
    %21 = tpu.transpose %20, [0, 2, 1, 3] : vector<1x8x4x8xbf16> -> vector<1x4x8x8xbf16>
    %22 = vector.shape_cast %21 : vector<1x4x8x8xbf16> to vector<4x8x8xbf16>
    %23 = arith.truncf %14 : vector<8x32xf32> to vector<8x32xbf16>
    %24 = vector.shape_cast %23 : vector<8x32xbf16> to vector<1x8x4x8xbf16>
    %25 = tpu.transpose %24, [0, 2, 1, 3] : vector<1x8x4x8xbf16> -> vector<1x4x8x8xbf16>
    %26 = vector.shape_cast %25 : vector<1x4x8x8xbf16> to vector<4x8x8xbf16>
    "tpu.trace_start"() <{level = 10 : i32, message = "hqd,hkd->hqk"}> : () -> ()
    %cst_7 = arith.constant dense<0.000000e+00> : vector<4x8x8xf32>
    %27 = tpu.matmul %18, %22, %cst_7 {dimension_numbers = #tpu.dot_dimension_numbers<[2], [2], [1], [1], [0, 0, 0, 1, 1, 1], [0], [0]>} : vector<4x8x8xbf16>, vector<4x8x8xbf16>, vector<4x8x8xf32> -> vector<4x8x8xf32>
    "tpu.trace_stop"() : () -> ()
    %cst_8 = arith.constant dense<0xFF800000> : vector<4x8xf32>
    %28 = vector.multi_reduction <maximumf>, %27, %cst_8 [2] : vector<4x8x8xf32> to vector<4x8xf32>
    %29 = vector.shape_cast %28 : vector<4x8xf32> to vector<4x8x1xf32>
    %30 = vector.broadcast %29 : vector<4x8x1xf32> to vector<4x8x8xf32>
    %31 = arith.subf %27, %30 : vector<4x8x8xf32>
    %32 = arith.truncf %31 : vector<4x8x8xf32> to vector<4x8x8xbf16>
    %33 = math.exp %32 : vector<4x8x8xbf16>
    %34 = arith.extf %33 : vector<4x8x8xbf16> to vector<4x8x8xf32>
    %cst_9 = arith.constant dense<0.000000e+00> : vector<4x8xf32>
    %35 = vector.multi_reduction <add>, %34, %cst_9 [2] : vector<4x8x8xf32> to vector<4x8xf32>
    %36 = vector.shape_cast %35 : vector<4x8xf32> to vector<4x8x1xf32>
    "tpu.trace_start"() <{level = 10 : i32, message = "hqk,hkd->hqd"}> : () -> ()
    %cst_10 = arith.constant dense<0.000000e+00> : vector<4x8x8xf32>
    %37 = tpu.matmul %33, %26, %cst_10 {dimension_numbers = #tpu.dot_dimension_numbers<[2], [1], [1], [2], [0, 0, 0, 1, 1, 2], [0], [0]>} : vector<4x8x8xbf16>, vector<4x8x8xbf16>, vector<4x8x8xf32> -> vector<4x8x8xf32>
    "tpu.trace_stop"() : () -> ()
    %38 = tpu.reciprocal %36 {approx = true} : vector<4x8x1xf32> -> vector<4x8x1xf32>
    %39 = vector.broadcast %38 : vector<4x8x1xf32> to vector<4x8x8xf32>
    %40 = arith.mulf %37, %39 : vector<4x8x8xf32>
    %41 = arith.truncf %40 : vector<4x8x8xf32> to vector<4x8x8xbf16>
    %42 = vector.shape_cast %41 : vector<4x8x8xbf16> to vector<1x4x8x8xbf16>
    %43 = tpu.transpose %42, [0, 2, 1, 3] : vector<1x4x8x8xbf16> -> vector<1x8x4x8xbf16>
    %44 = vector.shape_cast %43 : vector<1x8x4x8xbf16> to vector<8x32xbf16>
    %c0_11 = arith.constant 0 : index
    %c0_12 = arith.constant 0 : index
    %45 = vector.load %arg4[%c0_11, %c0_12] : memref<32x32xbf16, #tpu.memory_space<vmem>>, vector<32x32xbf16>
    %cst_13 = arith.constant dense<0.000000e+00> : vector<8x32xf32>
    %46 = tpu.matmul %44, %45, %cst_13 {dimension_numbers = #tpu.dot_dimension_numbers<[1], [0], [0], [1], [0, 0, 1, 1], [], []>} : vector<8x32xbf16>, vector<32x32xbf16>, vector<8x32xf32> -> vector<8x32xf32>
    %c0_14 = arith.constant 0 : index
    %c0_15 = arith.constant 0 : index
    %47 = vector.load %arg5[%c0_14, %c0_15] : memref<1x32xf32, #tpu.memory_space<vmem>>, vector<1x32xf32>
    %48 = vector.shape_cast %47 : vector<1x32xf32> to vector<32xf32>
    %49 = vector.shape_cast %48 : vector<32xf32> to vector<1x32xf32>
    %50 = vector.broadcast %49 : vector<1x32xf32> to vector<8x32xf32>
    %51 = arith.addf %46, %50 : vector<8x32xf32>
    %52 = arith.addf %1, %51 : vector<8x32xf32>
    %c0_16 = arith.constant 0 : index
    %c0_17 = arith.constant 0 : index
    %53 = vector.load %arg10[%c0_16, %c0_17] : memref<1x32xf32, #tpu.memory_space<vmem>>, vector<1x32xf32>
    %54 = vector.shape_cast %53 : vector<1x32xf32> to vector<32xf32>
    %c0_18 = arith.constant 0 : index
    %c0_19 = arith.constant 0 : index
    %55 = vector.load %arg11[%c0_18, %c0_19] : memref<1x32xf32, #tpu.memory_space<vmem>>, vector<1x32xf32>
    %56 = vector.shape_cast %55 : vector<1x32xf32> to vector<32xf32>
    %cst_20 = arith.constant dense<0.000000e+00> : vector<8xf32>
    %57 = vector.multi_reduction <add>, %52, %cst_20 [1] : vector<8x32xf32> to vector<8xf32>
    %58 = vector.shape_cast %57 : vector<8xf32> to vector<8x1xf32>
    %cst_21 = arith.constant 3.200000e+01 : f32
    %59 = vector.broadcast %cst_21 : f32 to vector<8x1xf32>
    %60 = arith.divf %58, %59 : vector<8x1xf32>
    %61 = vector.broadcast %60 : vector<8x1xf32> to vector<8x32xf32>
    %62 = arith.subf %52, %61 : vector<8x32xf32>
    %63 = arith.mulf %62, %62 : vector<8x32xf32>
    %cst_22 = arith.constant dense<0.000000e+00> : vector<8xf32>
    %64 = vector.multi_reduction <add>, %63, %cst_22 [1] : vector<8x32xf32> to vector<8xf32>
    %65 = vector.shape_cast %64 : vector<8xf32> to vector<8x1xf32>
    %cst_23 = arith.constant 3.200000e+01 : f32
    %66 = vector.broadcast %cst_23 : f32 to vector<8x1xf32>
    %67 = arith.divf %65, %66 : vector<8x1xf32>
    %68 = vector.broadcast %60 : vector<8x1xf32> to vector<8x32xf32>
    %69 = arith.subf %52, %68 : vector<8x32xf32>
    %cst_24 = arith.constant 9.99999974E-6 : f32
    %70 = vector.broadcast %cst_24 : f32 to vector<8x1xf32>
    %71 = arith.addf %67, %70 : vector<8x1xf32>
    %72 = math.rsqrt %71 : vector<8x1xf32>
    %73 = vector.broadcast %72 : vector<8x1xf32> to vector<8x32xf32>
    %74 = arith.mulf %69, %73 : vector<8x32xf32>
    %75 = vector.shape_cast %54 : vector<32xf32> to vector<1x32xf32>
    %76 = vector.broadcast %75 : vector<1x32xf32> to vector<8x32xf32>
    %77 = arith.mulf %74, %76 : vector<8x32xf32>
    %78 = vector.shape_cast %56 : vector<32xf32> to vector<1x32xf32>
    %79 = vector.broadcast %78 : vector<1x32xf32> to vector<8x32xf32>
    %80 = arith.addf %77, %79 : vector<8x32xf32>
    %81 = arith.truncf %80 : vector<8x32xf32> to vector<8x32xbf16>
    %c0_25 = arith.constant 0 : index
    %c0_26 = arith.constant 0 : index
    %82 = vector.load %arg6[%c0_25, %c0_26] : memref<32x64xbf16, #tpu.memory_space<vmem>>, vector<32x64xbf16>
    %cst_27 = arith.constant dense<0.000000e+00> : vector<8x64xf32>
    %83 = tpu.matmul %81, %82, %cst_27 {dimension_numbers = #tpu.dot_dimension_numbers<[1], [0], [0], [1], [0, 0, 1, 1], [], []>} : vector<8x32xbf16>, vector<32x64xbf16>, vector<8x64xf32> -> vector<8x64xf32>
    %c0_28 = arith.constant 0 : index
    %c0_29 = arith.constant 0 : index
    %84 = vector.load %arg7[%c0_28, %c0_29] : memref<1x64xf32, #tpu.memory_space<vmem>>, vector<1x64xf32>
    %85 = vector.shape_cast %84 : vector<1x64xf32> to vector<64xf32>
    %86 = vector.shape_cast %85 : vector<64xf32> to vector<1x64xf32>
    %87 = vector.broadcast %86 : vector<1x64xf32> to vector<8x64xf32>
    %88 = arith.addf %83, %87 : vector<8x64xf32>
    %cst_30 = arith.constant 0.000000e+00 : f32
    %89 = vector.broadcast %cst_30 : f32 to vector<8x64xf32>
    %90 = arith.maximumf %88, %89 : vector<8x64xf32>
    %91 = arith.truncf %90 : vector<8x64xf32> to vector<8x64xbf16>
    %c0_31 = arith.constant 0 : index
    %c0_32 = arith.constant 0 : index
    %92 = vector.load %arg8[%c0_31, %c0_32] : memref<64x32xbf16, #tpu.memory_space<vmem>>, vector<64x32xbf16>
    %cst_33 = arith.constant dense<0.000000e+00> : vector<8x32xf32>
    %93 = tpu.matmul %91, %92, %cst_33 {dimension_numbers = #tpu.dot_dimension_numbers<[1], [0], [0], [1], [0, 0, 1, 1], [], []>} : vector<8x64xbf16>, vector<64x32xbf16>, vector<8x32xf32> -> vector<8x32xf32>
    %c0_34 = arith.constant 0 : index
    %c0_35 = arith.constant 0 : index
    %94 = vector.load %arg9[%c0_34, %c0_35] : memref<1x32xf32, #tpu.memory_space<vmem>>, vector<1x32xf32>
    %95 = vector.shape_cast %94 : vector<1x32xf32> to vector<32xf32>
    %96 = vector.shape_cast %95 : vector<32xf32> to vector<1x32xf32>
    %97 = vector.broadcast %96 : vector<1x32xf32> to vector<8x32xf32>
    %98 = arith.addf %93, %97 : vector<8x32xf32>
    %99 = arith.addf %80, %98 : vector<8x32xf32>
    %c0_36 = arith.constant 0 : index
    %c0_37 = arith.constant 0 : index
    %100 = vector.load %arg12[%c0_36, %c0_37] : memref<1x32xf32, #tpu.memory_space<vmem>>, vector<1x32xf32>
    %101 = vector.shape_cast %100 : vector<1x32xf32> to vector<32xf32>
    %c0_38 = arith.constant 0 : index
    %c0_39 = arith.constant 0 : index
    %102 = vector.load %arg13[%c0_38, %c0_39] : memref<1x32xf32, #tpu.memory_space<vmem>>, vector<1x32xf32>
    %103 = vector.shape_cast %102 : vector<1x32xf32> to vector<32xf32>
    %cst_40 = arith.constant dense<0.000000e+00> : vector<8xf32>
    %104 = vector.multi_reduction <add>, %99, %cst_40 [1] : vector<8x32xf32> to vector<8xf32>
    %105 = vector.shape_cast %104 : vector<8xf32> to vector<8x1xf32>
    %cst_41 = arith.constant 3.200000e+01 : f32
    %106 = vector.broadcast %cst_41 : f32 to vector<8x1xf32>
    %107 = arith.divf %105, %106 : vector<8x1xf32>
    %108 = vector.broadcast %107 : vector<8x1xf32> to vector<8x32xf32>
    %109 = arith.subf %99, %108 : vector<8x32xf32>
    %110 = arith.mulf %109, %109 : vector<8x32xf32>
    %cst_42 = arith.constant dense<0.000000e+00> : vector<8xf32>
    %111 = vector.multi_reduction <add>, %110, %cst_42 [1] : vector<8x32xf32> to vector<8xf32>
    %112 = vector.shape_cast %111 : vector<8xf32> to vector<8x1xf32>
    %cst_43 = arith.constant 3.200000e+01 : f32
    %113 = vector.broadcast %cst_43 : f32 to vector<8x1xf32>
    %114 = arith.divf %112, %113 : vector<8x1xf32>
    %115 = vector.broadcast %107 : vector<8x1xf32> to vector<8x32xf32>
    %116 = arith.subf %99, %115 : vector<8x32xf32>
    %cst_44 = arith.constant 9.99999974E-6 : f32
    %117 = vector.broadcast %cst_44 : f32 to vector<8x1xf32>
    %118 = arith.addf %114, %117 : vector<8x1xf32>
    %119 = math.rsqrt %118 : vector<8x1xf32>
    %120 = vector.broadcast %119 : vector<8x1xf32> to vector<8x32xf32>
    %121 = arith.mulf %116, %120 : vector<8x32xf32>
    %122 = vector.shape_cast %101 : vector<32xf32> to vector<1x32xf32>
    %123 = vector.broadcast %122 : vector<1x32xf32> to vector<8x32xf32>
    %124 = arith.mulf %121, %123 : vector<8x32xf32>
    %125 = vector.shape_cast %103 : vector<32xf32> to vector<1x32xf32>
    %126 = vector.broadcast %125 : vector<1x32xf32> to vector<8x32xf32>
    %127 = arith.addf %124, %126 : vector<8x32xf32>
    %128 = vector.shape_cast %127 : vector<8x32xf32> to vector<1x8x32xf32>
    %c0_45 = arith.constant 0 : index
    %c0_46 = arith.constant 0 : index
    %c0_47 = arith.constant 0 : index
    %129 = vector.load %arg14[%c0_45, %c0_46, %c0_47] : memref<1x8x32xf32, #tpu.memory_space<vmem>>, vector<1x8x32xf32>
    tpu.vector_store %arg14[%c0_45, %c0_46, %c0_47], %128 {strides = array<i32>} : memref<1x8x32xf32, #tpu.memory_space<vmem>>, vector<1x8x32xf32>,
    return
  }
  func.func @transform_0(%arg0: i32) -> (i32, i32, i32) {
    %c0_i32 = arith.constant 0 : i32
    %c0_i32_0 = arith.constant 0 : i32
    %c0_i32_1 = arith.constant 0 : i32
    return %arg0, %c0_i32, %c0_i32_0 : i32, i32, i32
  }
  func.func @transform_1(%arg0: i32) -> (i32, i32) {
    %c0_i32 = arith.constant 0 : i32
    %c0_i32_0 = arith.constant 0 : i32
    %c0_i32_1 = arith.constant 0 : i32
    return %c0_i32, %c0_i32_0 : i32, i32
  }
  func.func @transform_2(%arg0: i32) -> (i32, i32) {
    %c0_i32 = arith.constant 0 : i32
    %c0_i32_0 = arith.constant 0 : i32
    %c0_i32_1 = arith.constant 0 : i32
    return %c0_i32, %c0_i32_0 : i32, i32
  }
  func.func @transform_3(%arg0: i32) -> (i32, i32) {
    %c0_i32 = arith.constant 0 : i32
    %c0_i32_0 = arith.constant 0 : i32
    %c0_i32_1 = arith.constant 0 : i32
    return %c0_i32, %c0_i32_0 : i32, i32
  }
  func.func @transform_4(%arg0: i32) -> (i32, i32) {
    %c0_i32 = arith.constant 0 : i32
    %c0_i32_0 = arith.constant 0 : i32
    %c0_i32_1 = arith.constant 0 : i32
    return %c0_i32, %c0_i32_0 : i32, i32
  }
  func.func @transform_5(%arg0: i32) -> (i32, i32) {
    %c0_i32 = arith.constant 0 : i32
    %c0_i32_0 = arith.constant 0 : i32
    %c0_i32_1 = arith.constant 0 : i32
    return %c0_i32, %c0_i32_0 : i32, i32
  }
  func.func @transform_6(%arg0: i32) -> (i32, i32) {
    %c0_i32 = arith.constant 0 : i32
    %c0_i32_0 = arith.constant 0 : i32
    %c0_i32_1 = arith.constant 0 : i32
    return %c0_i32, %c0_i32_0 : i32, i32
  }
  func.func @transform_7(%arg0: i32) -> (i32, i32) {
    %c0_i32 = arith.constant 0 : i32
    %c0_i32_0 = arith.constant 0 : i32
    %c0_i32_1 = arith.constant 0 : i32
    return %c0_i32, %c0_i32_0 : i32, i32
  }
  func.func @transform_8(%arg0: i32) -> (i32, i32) {
    %c0_i32 = arith.constant 0 : i32
    %c0_i32_0 = arith.constant 0 : i32
    %c0_i32_1 = arith.constant 0 : i32
    return %c0_i32, %c0_i32_0 : i32, i32
  }
  func.func @transform_9(%arg0: i32) -> (i32, i32) {
    %c0_i32 = arith.constant 0 : i32
    %c0_i32_0 = arith.constant 0 : i32
    %c0_i32_1 = arith.constant 0 : i32
    return %c0_i32, %c0_i32_0 : i32, i32
  }
  func.func @transform_10(%arg0: i32) -> (i32, i32) {
    %c0_i32 = arith.constant 0 : i32
    %c0_i32_0 = arith.constant 0 : i32
    %c0_i32_1 = arith.constant 0 : i32
    return %c0_i32, %c0_i32_0 : i32, i32
  }
  func.func @transform_11(%arg0: i32) -> (i32, i32) {
    %c0_i32 = arith.constant 0 : i32
    %c0_i32_0 = arith.constant 0 : i32
    %c0_i32_1 = arith.constant 0 : i32
    return %c0_i32, %c0_i32_0 : i32, i32
  }
  func.func @transform_12(%arg0: i32) -> (i32, i32) {
    %c0_i32 = arith.constant 0 : i32
    %c0_i32_0 = arith.constant 0 : i32
    %c0_i32_1 = arith.constant 0 : i32
    return %c0_i32, %c0_i32_0 : i32, i32
  }
  func.func @transform_13(%arg0: i32) -> (i32, i32, i32) {
    %c0_i32 = arith.constant 0 : i32
    %c0_i32_0 = arith.constant 0 : i32
    %c0_i32_1 = arith.constant 0 : i32
    return %arg0, %c0_i32, %c0_i32_0 : i32, i32, i32
  }
}

</mosaic_0001>

<bundles_post_ra>
// kernel: tpu_custom_call.1
= control target key start
LH: loop header
LB: loop body
LE: loop exit
PB: predicated region body
PF: predicated region fallthrough
CT: control target
= control target key end

     0   :  { %s2807_s0 = inlined_call_operand.vmem [shape: f32[2,8,32], index: 0, kind: input, shape index: {}]   ;;  %s2808_s1 = inlined_call_operand.vmem [shape: bf16[32,96], index: 1, kind: input, shape index: {}]   ;;  %s2809_s2 = inlined_call_operand.vmem [shape: f32[1,96], index: 2, kind: input, shape index: {}]   ;;  %s2810_s3 = inlined_call_operand.vmem [shape: bf16[32,32], index: 3, kind: input, shape index: {}]   ;;  %s2811_s4 = inlined_call_operand.vmem [shape: f32[1,32], index: 4, kind: input, shape index: {}]   ;;  %s2812_s5 = inlined_call_operand.hbm [shape: bf16[32,64], index: 5, kind: input, shape index: {}]   ;;  %s2813_s6 = inlined_call_operand.vmem [shape: f32[1,64], index: 6, kind: input, shape index: {}]   ;;  %s2814_s7 = inlined_call_operand.vmem [shape: bf16[64,32], index: 7, kind: input, shape index: {}]   ;;  %s2815_s8 = inlined_call_operand.vmem [shape: f32[1,32], index: 8, kind: input, shape index: {}]   ;;  %s2816_s9 = inlined_call_operand.vmem [shape: f32[1,32], index: 9, kind: input, shape index: {}]   ;;  %s2817_s10 = inlined_call_operand.vmem [shape: f32[1,32], index: 10, kind: input, shape index: {}]   ;;  %s2818_s11 = inlined_call_operand.vmem [shape: f32[1,32], index: 11, kind: input, shape index: {}]   ;;  %s2819_s12 = inlined_call_operand.vmem [shape: f32[1,32], index: 12, kind: input, shape index: {}]   ;;  %s2820_s13 = inlined_call_operand.hbm [shape: f32[2,8,32], index: 13, kind: output, shape index: {}]  }
   0x1   :  { %2827 = sst [smem:[#allocation11_spill]] %s2807_s0 }
   0x2   :  { %18 = vsyncpa [#allocation3], 0 }
   0x3   :  { %19 = vsyncpa [#allocation4], 0 }
   0x4   :  { %21 = vsyncpa [#allocation4 + $0x1], 0  ;;  %s2440_s25 = smov 0   ;;  %s2442_s26 = smov 0  }
   0x5   :  { %s2444_s27 = smov 0   ;;  %s2446_s28 = smov 0  }
   0x6 LB: > { %2828 = sst [smem:[#allocation8_spill]] %s2347_s27  ;;  %s2461_s29 = sadd.s32 4294967295, %s2351_s28   ;;  %s2351_s28 = sphi %s2446_s28, %s2841_s28   ;;  %s2347_s27 = sphi %s2444_s27, %s2843_s27   ;;  %s2343_s26 = sphi %s2442_s26, %s2845_s26   ;;  %s2339_s25 = sphi %s2440_s25, %s2844_s25  }
   0x7   : > { %s2006_s30 = sadd.s32 4294967294, %s2351_s28   ;;  %s2465_s14 = sadd.s32 1, %s2351_s28  }
   0x8   : > { %2829 = sst [smem:[#allocation9_spill]] %s2465_s14  ;;  %s312_s15 = sadd.s32 1, %s2347_s27 }
   0x9   : > { %s309_s16 = ssub.s32 %s2351_s28, %s2465_s14  ;;  %p322_p0 = scmp.ne.s32.totalorder %s2347_s27, %s2343_s26 }
   0xa   : > { %p310_p1 = scmp.eq.s32.totalorder %s309_s16, 0  ;;  %p323_p2 = scmp.eq.s32.totalorder %s2461_s29, 1 }
   0xb   : > { %p328_p3 = scmp.ne.s32.totalorder %s2343_s26, %s2339_s25  ;;  %p329_p4 = scmp.eq.s32.totalorder %s2006_s30, 1 }
   0xc   : > { %s2476_s17 = scalar_select %p310_p1, %s2347_s27, %s312_s15  }
   0xd   : > { %p2478_p5 = por %p323_p2, %p322_p0  ;;  %p2482_p6 = por %p329_p4, %p328_p3 }
   0xe   : > { %2830 = sst [smem:[#allocation10_spill]] %s2476_s17  ;;  %p2007_p7 = scmp.ge.s32.totalorder %s2351_s28, 1 }
   0xf   : > { %s2831_s18 = scalar_select %p2478_p5, 1, 0 }
  0x10   : > { %s2832_s19 = scalar_select %p2482_p6, 1, 0 }
  0x11   : > { %p336_p8 = scmp.lt.s32.totalorder %s2351_s28, 3  ;;  %p2824_p9 = scmp.eq.s32.totalorder %s2461_s29, 0 }
  0x12   : > { %s2353_s21 = smov [#allocation2]   ;;  %s2257_s15 = scalar_lea.hbm %s2812_s5, 256 }
  0x13   : > { %p2489_p10 = pnand %p2007_p7, %p336_p8  ;;  %s360_s22 = sshll.u32 %s2353_s21, 4  ;;  %s361_s22 = int_to_ptr.vmem [resolvable:$true] %s360_s22 }
  0x14   : > { %p2258_p13 = scmp.ne.s32.totalorder %s2812_s5, %s2257_s15  ;;  %p2264_p3 = scmp.lt.u32.totalorder %s2257_s15, %s2812_s5 }
  0x15   : > { %s2833_s20 = scalar_select %p2489_p10, 1, 0 }
  0x16   : > { %p2168_p11 = pneg %p2489_p10 }
  0x18   : > { %p2497_p12 = pnand %p2824_p9, %p2168_p11 }
  0x1a   : > { %p2259_p0 = pneg %p2497_p12 }
  0x1c   : > { %p2260_p1 = pnand %p2259_p0, %p2258_p13 }
  0x1e   : > { %p2261_p2 = pneg %p2260_p1 }
  0x20   : > { %p2266_p4 = pnand %p2264_p3, %p2261_p2 }
  0x22   : > { %2269 = shalt.err (!%p2266_p4)
}
  0x23   : > { %s2270_s14 = scalar_lea.vmem %s361_s22, 256  ;;  %p2278_p9 = scmp.lt.s32.totalorder %s361_s22, %s361_s22 }
  0x24   : > { %p2271_p7 = scmp.ne.s32.totalorder %s361_s22, %s2270_s14  ;;  %p2279_p6 = scmp.lt.s32.totalorder %s2270_s14, %s2270_s14 }
  0x26   : > { %p2273_p8 = pnand %p2271_p7, %p2259_p0  ;;  %p2280_p5 = por %p2279_p6, %p2278_p9 }
  0x28   : > { %p2274_p11 = pneg %p2273_p8 }
  0x2a   : > { %p2281_p10 = pnand %p2280_p5, %p2274_p11 }
  0x2c   : > { %2284 = shalt.err (!%p2281_p10)
}
  0x2d   : > { %s2354_s17 = smov 64   ;;  %s2355_s24 = smov 4  }
  0x2e   : > { %2171 = dma.hbm_to_vmem [thread:$0]  (!%p2497_p12), %s2812_s5, 256, %s361_s22, [#allocation3], %s2354_s17, %s2354_s17, %s2355_s24  }
  0x2f   : > { %p2835_p13 = scmp.ne.s32.totalorder %s2833_s20, 0 }
  0x30   : > { %p2836_p1 = scmp.eq.s32.totalorder (!%p2835_p13), %s2461_s29, 0 }
  0x31   : > { %404 = sbr.rel (%p2835_p13) target bundleno = 2632 (0xa48), region = 72 }
  0x38   : > { %2330 = dma.done.wait (%p2836_p1), [#allocation3], 256   ;;  %p2837_p0 = pmov %p2836_p1 }
  0x39   : > { %p447_p5 = scmp.lt.s32.totalorder %s2461_s29, 1  ;;  %v2356_v0 = vmov 0.0   ;;  %vm2357_vm0 = vmmov 0   ;;  %s2838_s0 = sld [smem:[#allocation11_spill]]  ;;  %v2227_v1 = vld [vmem:[%s2808_s1] sm:$0xff]   ;;  %v2228_v2 = vld [vmem:[%s2808_s1 + $0x8] sm:$0xff]   ;;  %v533_v19 = vlaneseq }
  0x3a   : > { %2332 = vsyncadd (%p2837_p0), [#allocation3], 4294967040  ;;  %2078 = vmatprep.subr.bf16.mxu0 %v2356_v0  ;;  %2082 = vmatprep.mubr.msk.bf16.mxu0 %vm2357_vm0, %v2356_v0  ;;  %vm477_vm1 = vcmask 261120   ;;  %v2014_v5 = vld [vmem:[%s2809_s2] ss:$0 sm:$0xff]  ;;  %s2360_s20 = smov 96  }
  0x3b   : > { %s448_s27 = scalar_select %p447_p5, %s2461_s29, 1  ;;  %2086 = vmatprep.subr.bf16.mxu1 %v2356_v0  ;;  %2088 = vmatprep.mubr.msk.bf16.mxu1 %vm2357_vm0, %v2356_v0  ;;  %v2363_v17 = vmov 1983009808   ;;  %v2364_v20 = vmov 1934713408   ;;  %v534_v23 = vshrl.u32 %v533_v19, 7 }
  0x3c   : > { %2079 = vmatpush3.bf16.msra.mxu0 %v2227_v1  ;;  %s2361_s22 = smov 112   ;;  %v531_v18 = vunpack.c.l.s4 %v2363_v17  ;;  %v548_v21 = vunpack.c.l.s4 %v2364_v20  ;;  %v2365_v47 = vmov 0   ;;  %vm1039_vm2 = vcmask 64512   ;;  %s2366_s30 = smov 8  }
  0x3d   : > { %s2013_s14 = sshll.u32 %s448_s27, 3  ;;  %2080 = vmatprep.subr.bf16.mxu0 %v2356_v0  ;;  %s2358_s27 = smov 104   ;;  %vm1275_vm3 = vcmask 1043456   ;;  %vm1636_vm4 = vcmask 130048   ;;  %vm1639_vm5 = vcmask 195584   ;;  %vm1846_vm6 = vcmask 523264  }
  0x3e   : > { %v532_v22 = vunpack.c.0.s8 %v531_v18  ;;  %v549_v26 = vunpack.c.0.s8 %v548_v21  ;;  %s2367_s16 = smov 16   ;;  %s444_s24 = sand.u32 1, %s2343_s26  }
  0x3f   : > { %s450_s23 = scalar_lea.vmem %s2838_s0, %s2013_s14  ;;  %s2359_s14 = smov 120  }
  0x40   : > { %v2540_v3 = vld [vmem:[%s450_s23] sm:$0xff]  ;;  %2081 = vmatpush3.bf16.msra.mxu0 %v2228_v2  ;;  %s2362_s23 = smov 64   ;;  %v2560_v27 = vsub.s32 %v532_v22, %v534_v23  ;;  %v2562_v28 = vsub.s32 %v549_v26, %v534_v23  ;;  %p2839_p9 = scmp.ne.s32.totalorder %s2831_s18, 0 }
  0x41   : > { %v453_v4 = vpack.c.bf16 %v2540_v3, %v2540_v3  ;;  %2092 = vmatprep.subr.bf16.mxu0 %v2356_v0 }
  0x43   : > { %2083 = vmatmul.mubr.msk.bf16.vlgmr.msra.gmra.mrb[0].mxu0 %vm477_vm1, %v453_v4 }
  0x44   : > { %2094 = vmatprep.mubr.msk.bf16.mxu0 %vm2357_vm0, %v2356_v0 }
 0x116   : > { %v515_v6 = vpop.f32.mrb[0].mxu0 }
 0x117   : > { %v516_v7 = vadd.f32 %v2014_v5, %v515_v6  ;;  %v2084_v8 = vpop.f32.mrb[1].mxu0 }
 0x118   : > { %v518_v9 = vpop.f32.mrb[2].mxu0 }
 0x119   : > { %v691_v10 = vpack.c.bf16 %v516_v7, %v516_v7  ;;  %v2085_v11 = vpop.f32.mrb[3].mxu0  ;;  %v521_v13 = vmul.f32 0.35355338, %v516_v7 }
 0x11b   : > { %697 = vrot.lane.b32.xlu1 %v691_v10, %s2358_s27  ;;  %693 = vrot.lane.b32.xlu0 %v691_v10, %s2359_s14  ;;  %v522_v16 = vpack.c.bf16 %v521_v13, %v521_v13 }
 0x11d   : > { %v536_v45 = vrot.slane %v522_v16, %v2560_v27 }
 0x11f   : > { %699 = vrot.lane.b32.xlu1 %v691_v10, %s2360_s20  ;;  %695 = vrot.lane.b32.xlu0 %v691_v10, %s2361_s22 }
 0x18d   : > { %v694_v12 = vpop.permute.xlu0 %693  ;;  %v2552_v14 = vpop.permute.xlu1 %697 }
 0x18e   : > { %701 = vrot.lane.b32.xlu0 %v694_v12, %s2360_s20 }
 0x191   : > { %v2554_v15 = vpop.permute.xlu0 %695  ;;  %v700_v24 = vpop.permute.xlu1 %699 }
 0x192   : > { %705 = vrot.lane.b32.xlu0 %v2552_v14, %s2360_s20  ;;  %703 = vrot.lane.b32.xlu1 %v2554_v15, %s2360_s20  ;;  %v714_v31 = vrot.slane %v700_v24, %v2560_v27 }
 0x196   : > { %526 = vrot.lane.b32.xlu0 %v522_v16, %s2361_s22  ;;  %524 = vrot.lane.b32.xlu1 %v522_v16, %s2359_s14  ;;  %s2045_s22 = sshll.u32 %s2461_s29, 7  ;;  %s2369_s29 = smov [#allocation5]  }
 0x197   : > { %s2764_s0 = scalar_lea.hbm %s2820_s13, %s2045_s22 }
 0x19a   : > { %869 = vrot.lane.b32.xlu0 %v691_v10, %s2362_s23  ;;  %528 = vrot.lane.b32.xlu1 %v522_v16, %s2358_s27  ;;  %s2368_s27 = smov 24  }
 0x19e   : > { %871 = vrot.lane.b32.xlu1 %v694_v12, %s2362_s23 }
 0x200   : > { %v702_v25 = vpop.permute.xlu0 %701 }
 0x201   : > { %v748_v32 = vrot.slane %v702_v25, %v2560_v27 }
 0x204   : > { %v704_v29 = vpop.permute.xlu1 %703  ;;  %v706_v30 = vpop.permute.xlu0 %705 }
 0x205   : > { %v722_v33 = vrot.slane %v704_v29, %v2560_v27  ;;  %v756_v34 = vrot.slane %v706_v30, %v2560_v27 }
 0x207   : > { %v723_v35 = vcombine.low %v714_v31, %v722_v33  ;;  %v724_v36 = vcombine.high %v714_v31, %v722_v33  ;;  %v757_v37 = vcombine.low %v748_v32, %v756_v34  ;;  %v758_v38 = vcombine.high %v748_v32, %v756_v34 }
 0x208   : > { %v527_v39 = vpop.permute.xlu0 %526  ;;  %v525_v40 = vpop.permute.xlu1 %524 }
 0x209   : > { %v731_v41 = vrot.slane %v723_v35, %v2562_v28  ;;  %v738_v42 = vrot.slane %v724_v36, %v2562_v28  ;;  %v765_v43 = vrot.slane %v757_v37, %v2562_v28  ;;  %v772_v44 = vrot.slane %v758_v38, %v2562_v28 }
 0x20a   : > { %v544_v46 = vrot.slane %v527_v39, %v2560_v27  ;;  %v570_v9 = vrot.slane %v525_v40, %v2560_v27 }
 0x20b   : > { %v739_v48 = vcombine.high %v731_v41, %v2365_v47  ;;  %v740_v49 = vcombine.high %v738_v42, %v2365_v47  ;;  %v779_v50 = vshrl.u32 %v731_v41, 16  ;;  %v795_v51 = vshrl.u32 %v738_v42, 16 }
 0x20c   : > { %v773_v52 = vcombine.high %v765_v43, %v2365_v47  ;;  %v774_v53 = vcombine.high %v772_v44, %v2365_v47  ;;  %v777_v54 = vpack.i.b16 %v765_v43, %v731_v41  ;;  %v780_v55 = vshrl.u32 %v765_v43, 16  ;;  %v529_v60 = vpop.permute.xlu1 %528 }
 0x20d   : > { %v787_v56 = vshrl.u32 %v739_v48, 16  ;;  %v803_v57 = vshrl.u32 %v740_v49, 16  ;;  %v793_v58 = vpack.i.b16 %v772_v44, %v738_v42  ;;  %v796_v59 = vshrl.u32 %v772_v44, 16 }
 0x20e   : > { %v781_v61 = vpack.i.b16 %v780_v55, %v779_v50  ;;  %v785_v62 = vpack.i.b16 %v773_v52, %v739_v48  ;;  %v788_v63 = vshrl.u32 %v773_v52, 16  ;;  %v801_v1 = vpack.i.b16 %v774_v53, %v740_v49 }
 0x20f   : > { %v797_v2 = vpack.i.b16 %v796_v59, %v795_v51  ;;  %v804_v4 = vshrl.u32 %v774_v53, 16  ;;  %v807_v5 = vcombine.low %v777_v54, %v793_v58  ;;  %v545_v6 = vcombine.low %v536_v45, %v544_v46 }
 0x210   : > { %v789_v7 = vpack.i.b16 %v788_v63, %v787_v56  ;;  %v546_v8 = vcombine.high %v536_v45, %v544_v46  ;;  %v578_v10 = vrot.slane %v529_v60, %v2560_v27  ;;  %v815_v19 = vcombine.low %v785_v62, %v801_v1 }
 0x211   : > { %v805_v11 = vpack.i.b16 %v804_v4, %v803_v57  ;;  %v553_v12 = vrot.slane %v545_v6, %v2562_v28  ;;  %v814_v13 = vrot.slane %v807_v5, %v2560_v27  ;;  %v832_v22 = vcombine.low %v781_v61, %v797_v2 }
 0x212   : > { %v560_v16 = vrot.slane %v546_v8, %v2562_v28  ;;  %v579_v17 = vcombine.low %v570_v9, %v578_v10  ;;  %v580_v18 = vcombine.high %v570_v9, %v578_v10  ;;  %v822_v31 = vrot.slane %v815_v19, %v2560_v27 }
 0x213   : > { %v561_v20 = vcombine.high %v553_v12, %v2365_v47  ;;  %v601_v21 = vshrl.u32 %v553_v12, 16  ;;  %v840_v23 = vcombine.low %v789_v7, %v805_v11  ;;  %v839_v32 = vrot.slane %v832_v22, %v2560_v27 }
 0x214   : > { %v562_v24 = vcombine.high %v560_v16, %v2365_v47  ;;  %v617_v25 = vshrl.u32 %v560_v16, 16  ;;  %v587_v26 = vrot.slane %v579_v17, %v2562_v28  ;;  %v594_v29 = vrot.slane %v580_v18, %v2562_v28 }
 0x215   : > { %v609_v30 = vshrl.u32 %v561_v20, 16  ;;  %v847_v33 = vrot.slane %v840_v23, %v2560_v27  ;;  %v823_v41 = vcombine.low %v814_v13, %v822_v31 }
 0x216   : > { %v625_v34 = vshrl.u32 %v562_v24, 16  ;;  %v595_v35 = vcombine.high %v587_v26, %v2365_v47  ;;  %v596_v36 = vcombine.high %v594_v29, %v2365_v47  ;;  %v599_v37 = vpack.i.b16 %v587_v26, %v553_v12 }
 0x217   : > { %v602_v38 = vshrl.u32 %v587_v26, 16  ;;  %v615_v39 = vpack.i.b16 %v594_v29, %v560_v16  ;;  %v618_v40 = vshrl.u32 %v594_v29, 16  ;;  %v830_v50 = vrot.slane %v823_v41, %v2562_v28 }
 0x218   : > { %v607_v42 = vpack.i.b16 %v595_v35, %v561_v20  ;;  %v610_v43 = vshrl.u32 %v595_v35, 16  ;;  %v623_v44 = vpack.i.b16 %v596_v36, %v562_v24  ;;  %v626_v45 = vshrl.u32 %v596_v36, 16 }
 0x219   : > { %v603_v46 = vpack.i.b16 %v602_v38, %v601_v21  ;;  %v619_v48 = vpack.i.b16 %v618_v40, %v617_v25  ;;  %v629_v49 = vcombine.low %v599_v37, %v615_v39  ;;  %v848_v54 = vcombine.low %v839_v32, %v847_v33 }
 0x21a   : > { %v611_v51 = vpack.i.b16 %v610_v43, %v609_v30  ;;  %v627_v52 = vpack.i.b16 %v626_v45, %v625_v34  ;;  %v637_v53 = vcombine.low %v607_v42, %v623_v44  ;;  %v860_v61 = vshrl.u32 %v830_v50, 16 }
 0x21b   : > { %v654_v55 = vcombine.low %v603_v46, %v619_v48  ;;  %v636_v56 = vrot.slane %v629_v49, %v2560_v27  ;;  %v855_v59 = vrot.slane %v848_v54, %v2562_v28  ;;  %v831_v4 = vcombine.high %v830_v50, %v2365_v47  ;;  %v872_v54 = vpop.permute.xlu1 %871 }
 0x21c   : > { %v644_v57 = vrot.slane %v637_v53, %v2560_v27  ;;  %v662_v58 = vcombine.low %v611_v51, %v627_v52  ;;  %v870_v53 = vpop.permute.xlu0 %869 }
 0x21d   : > { %v661_v60 = vrot.slane %v654_v55, %v2560_v27  ;;  %v859_v62 = vpack.i.b16 %v855_v59, %v830_v50  ;;  %v861_v63 = vshrl.u32 %v855_v59, 16  ;;  %v856_v5 = vcombine.high %v855_v59, %v2365_v47 }
 0x21e   : > { %v645_v1 = vcombine.low %v636_v56, %v644_v57  ;;  %v669_v2 = vrot.slane %v662_v58, %v2560_v27  ;;  %v866_v13 = vshrl.u32 %v831_v4, 16 }
 0x21f   : > { %v1044_v6 = vsel %vm1039_vm2, %v859_v62, 0  ;;  %v862_v7 = vpack.i.b16 %v861_v63, %v860_v61  ;;  %v867_v12 = vshrl.u32 %v856_v5, 16  ;;  %v865_v17 = vpack.i.b16 %v856_v5, %v831_v4 }
 0x220   : > { %v652_v8 = vrot.slane %v645_v1, %v2562_v28  ;;  %v670_v9 = vcombine.low %v661_v60, %v669_v2  ;;  %2087 = vmatpush3.bf16.xpose.msra.mxu1 %v1044_v6  ;;  %v918_v5 = vrot.slane %v872_v54, %v2560_v27 }
 0x221   : > { %v1090_v10 = vsel %vm1039_vm2, %v862_v7, 0  ;;  %2098 = vmatprep.subr.bf16.mxu1 %v2356_v0  ;;  %v868_v21 = vpack.i.b16 %v867_v12, %v866_v13  ;;  %v1136_v22 = vsel %vm1039_vm2, %v865_v17, 0 }
 0x222   : > { %v677_v11 = vrot.slane %v670_v9, %v2562_v28  ;;  %2093 = vmatpush3.bf16.xpose.msra.mxu0 %v1090_v10  ;;  %v682_v18 = vshrl.u32 %v652_v8, 16  ;;  %v653_v25 = vcombine.high %v652_v8, %v2365_v47 }
 0x223   : > { %2104 = vmatprep.subr.bf16.mxu0 %v2356_v0  ;;  %v1182_v24 = vsel %vm1039_vm2, %v868_v21, 0 }
 0x224   : > { %v681_v16 = vpack.i.b16 %v677_v11, %v652_v8  ;;  %v683_v19 = vshrl.u32 %v677_v11, 16  ;;  %v678_v23 = vcombine.high %v677_v11, %v2365_v47  ;;  %v688_v30 = vshrl.u32 %v653_v25, 16 }
 0x226   : > { %v684_v20 = vpack.i.b16 %v683_v19, %v682_v18  ;;  %v689_v26 = vshrl.u32 %v678_v23, 16  ;;  %v687_v29 = vpack.i.b16 %v678_v23, %v653_v25 }
 0x227   : > { %2089 = vmatmul.mubr.msk.bf16.vlgmr.msra.gmra.mrb[0].mxu1 %vm1039_vm2, %v681_v16 }
 0x228   : > { %2099 = vmatpush3.bf16.xpose.msra.mxu1 %v1136_v22  ;;  %2100 = vmatprep.mubr.msk.bf16.mxu1 %vm2357_vm0, %v2356_v0  ;;  %v690_v31 = vpack.i.b16 %v689_v26, %v688_v30 }
 0x229   : > { %2095 = vmatmul.mubr.msk.bf16.vlgmr.msra.gmra.mrb[4].mxu0 %vm1039_vm2, %v684_v20  ;;  %2110 = vmatprep.subr.bf16.mxu1 %v2356_v0 }
 0x22a   : > { %2105 = vmatpush3.bf16.xpose.msra.mxu0 %v1182_v24  ;;  %2106 = vmatprep.mubr.msk.bf16.mxu0 %vm2357_vm0, %v2356_v0 }
 0x22b   : > { %2116 = vmatprep.subr.bf16.mxu0 %v2356_v0 }
 0x22f   : > { %2101 = vmatmul.mubr.msk.bf16.vlgmr.msra.gmra.mrb[4].mxu1 %vm1039_vm2, %v687_v29 }
 0x230   : > { %2112 = vmatprep.mubr.msk.bf16.mxu1 %vm2357_vm0, %v2356_v0 }
 0x231   : > { %2107 = vmatmul.mubr.msk.bf16.vlgmr.msra.gmra.mrb[8].mxu0 %vm1039_vm2, %v690_v31 }
 0x232   : > { %2118 = vmatprep.mubr.msk.bf16.mxu0 %vm2357_vm0, %v2356_v0 }
 0x2fa   : > { %v1080_v32 = vpop.f32.mrb[0].mxu1 }
 0x2fb   : > { %v2090_v33 = vpop.f32.mrb[1].mxu1  ;;  %v1224_v34 = vsel %vm1039_vm2, %v1080_v32, -inf }
 0x2fc   : > { %1225 = vmax.xlane.f32.xlu0 %v1224_v34  ;;  %v1083_v35 = vpop.f32.mrb[2].mxu1  ;;  %v1126_v36 = vpop.f32.mrb[4].mxu0 }
 0x2fd   : > { %v2091_v37 = vpop.f32.mrb[3].mxu1  ;;  %v2096_v38 = vpop.f32.mrb[5].mxu0  ;;  %v1227_v39 = vsel %vm1039_vm2, %v1126_v36, -inf }
 0x2fe   : > { %1228 = vmax.xlane.f32.xlu1 %v1227_v39  ;;  %v1129_v40 = vpop.f32.mrb[6].mxu0 }
 0x2ff   : > { %v2097_v41 = vpop.f32.mrb[7].mxu0 }
 0x302   : > { %v2626_v42 = vpop.f32.mrb[4].mxu1 }
 0x303   : > { %v2102_v43 = vpop.f32.mrb[5].mxu1  ;;  %v1230_v51 = vsel %vm1039_vm2, %v2626_v42, -inf }
 0x304   : > { %v1175_v44 = vpop.f32.mrb[6].mxu1  ;;  %v2628_v45 = vpop.f32.mrb[8].mxu0 }
 0x305   : > { %v2103_v46 = vpop.f32.mrb[7].mxu1  ;;  %v2108_v48 = vpop.f32.mrb[9].mxu0  ;;  %v1233_v52 = vsel %vm1039_vm2, %v2628_v45, -inf }
 0x306   : > { %v1221_v49 = vpop.f32.mrb[10].mxu0 }
 0x307   : > { %v2109_v50 = vpop.f32.mrb[11].mxu0 }
 0x30f   : > { %875 = vrot.lane.b32.xlu1 %v2552_v14, %s2362_s23  ;;  %v884_v14 = vrot.slane %v870_v53, %v2560_v27 }
 0x312   : > { %873 = vrot.lane.b32.xlu0 %v2554_v15, %s2362_s23 }
 0x331   : > { %1231 = vmax.xlane.f32.xlu0 %v1230_v51 }
 0x333   : > { %1234 = vmax.xlane.f32.xlu1 %v1233_v52 }
 0x389   : > { %v1226_v55 = vpop.xlane.xlu0 %1225 }
 0x38a   : > { %v1236_v56 = vsub.f32 %v1080_v32, %v1226_v55 }
 0x38b   : > { %v1229_v57 = vpop.xlane.xlu1 %1228 }
 0x38c   : > { %v1240_v58 = vpack.c.bf16 %v1236_v56, %v1236_v56  ;;  %v1237_v59 = vsub.f32 %v1126_v36, %v1229_v57 }
 0x38d   : > { %v874_v60 = vpop.permute.xlu0 %873 }
 0x38e   : > { %v1245_v61 = vmul.bf16 1069105081, %v1240_v58  ;;  %v1241_v15 = vpack.c.bf16 %v1237_v59, %v1237_v59  ;;  %v892_v62 = vrot.slane %v874_v60, %v2560_v27 }
 0x38f   : > { %v876_v63 = vpop.permute.xlu1 %875 }
 0x390   : > { %2237 = vpow.bf16 %v1245_v61  ;;  %v1248_v1 = vmul.bf16 1069105081, %v1241_v15  ;;  %v893_v2 = vcombine.low %v884_v14, %v892_v62  ;;  %v894_v4 = vcombine.high %v884_v14, %v892_v62 }
 0x391   : > { %v926_v6 = vrot.slane %v876_v63, %v2560_v27 }
 0x392   : > { %2239 = vpow.bf16 %v1248_v1  ;;  %v901_v7 = vrot.slane %v893_v2, %v2562_v28  ;;  %v908_v8 = vrot.slane %v894_v4, %v2562_v28 }
 0x393   : > { %v927_v9 = vcombine.low %v918_v5, %v926_v6  ;;  %v928_v10 = vcombine.high %v918_v5, %v926_v6 }
 0x394   : > { %v909_v11 = vcombine.high %v901_v7, %v2365_v47  ;;  %v910_v16 = vcombine.high %v908_v8, %v2365_v47  ;;  %v949_v17 = vshrl.u32 %v901_v7, 16  ;;  %v965_v23 = vshrl.u32 %v908_v8, 16 }
 0x395   : > { %v935_v12 = vrot.slane %v927_v9, %v2562_v28  ;;  %v942_v13 = vrot.slane %v928_v10, %v2562_v28 }
 0x396   : > { %v957_v22 = vshrl.u32 %v909_v11, 16  ;;  %v973_v32 = vshrl.u32 %v910_v16, 16 }
 0x397   : > { %v943_v18 = vcombine.high %v935_v12, %v2365_v47  ;;  %v944_v19 = vcombine.high %v942_v13, %v2365_v47  ;;  %v947_v20 = vpack.i.b16 %v935_v12, %v901_v7  ;;  %v950_v21 = vshrl.u32 %v935_v12, 16 }
 0x398   : > { %v963_v24 = vpack.i.b16 %v942_v13, %v908_v8  ;;  %v966_v25 = vshrl.u32 %v942_v13, 16 }
 0x399   : > { %v951_v26 = vpack.i.b16 %v950_v21, %v949_v17  ;;  %v955_v29 = vpack.i.b16 %v943_v18, %v909_v11  ;;  %v958_v30 = vshrl.u32 %v943_v18, 16  ;;  %v971_v31 = vpack.i.b16 %v944_v19, %v910_v16 }
 0x39a   : > { %v967_v33 = vpack.i.b16 %v966_v25, %v965_v23  ;;  %v974_v34 = vshrl.u32 %v944_v19, 16  ;;  %v977_v35 = vcombine.low %v947_v20, %v963_v24 }
 0x39b   : > { %v2238_v36 = vpop.eup %2237  ;;  %v959_v37 = vpack.i.b16 %v958_v30, %v957_v22  ;;  %v985_v38 = vcombine.low %v955_v29, %v971_v31  ;;  %v2229_v22 = vld [vmem:[%s2810_s3] sm:$0xff]  }
 0x39c   : > { %v975_v39 = vpack.i.b16 %v974_v34, %v973_v32  ;;  %v1002_v40 = vcombine.low %v951_v26, %v967_v33  ;;  %v1256_v41 = vunpack.c.l.bf16 %v2238_v36  ;;  %v984_v44 = vrot.slane %v977_v35, %v2560_v27 }
 0x39d   : > { %v2240_v43 = vpop.eup %2239  ;;  %v992_v46 = vrot.slane %v985_v38, %v2560_v27 }
 0x39e   : > { %v1010_v48 = vcombine.low %v959_v37, %v975_v39  ;;  %v1260_v49 = vsel %vm1039_vm2, %v1256_v41, 0.0  ;;  %v1257_v50 = vunpack.c.l.bf16 %v2240_v43  ;;  %v1009_v52 = vrot.slane %v1002_v40, %v2560_v27 }
 0x39f   : > { %1261 = vadd.xlane.f32.xlu0 %v1260_v49  ;;  %v993_v51 = vcombine.low %v984_v44, %v992_v46 }
 0x3a0   : > { %v1017_v53 = vrot.slane %v1010_v48, %v2560_v27  ;;  %v1263_v55 = vsel %vm1039_vm2, %v1257_v50, 0.0 }
 0x3a1   : > { %v1000_v54 = vrot.slane %v993_v51, %v2562_v28 }
 0x3a2   : > { %v1018_v56 = vcombine.low %v1009_v52, %v1017_v53 }
 0x3a3   : > { %1264 = vadd.xlane.f32.xlu0 %v1263_v55  ;;  %v1001_v57 = vcombine.high %v1000_v54, %v2365_v47  ;;  %v1030_v60 = vshrl.u32 %v1000_v54, 16 }
 0x3a4   : > { %v1025_v58 = vrot.slane %v1018_v56, %v2562_v28 }
 0x3a5   : > { %v1036_v15 = vshrl.u32 %v1001_v57, 16 }
 0x3a6   : > { %v1029_v59 = vpack.i.b16 %v1025_v58, %v1000_v54  ;;  %v1031_v14 = vshrl.u32 %v1025_v58, 16  ;;  %v1026_v61 = vcombine.high %v1025_v58, %v2365_v47 }
 0x3a8   : > { %v1277_v62 = vsel %vm1275_vm3, %v1029_v59, 0  ;;  %v1032_v63 = vpack.i.b16 %v1031_v14, %v1030_v60  ;;  %v1035_v1 = vpack.i.b16 %v1026_v61, %v1001_v57  ;;  %v1037_v2 = vshrl.u32 %v1026_v61, 16 }
 0x3a9   : > { %2111 = vmatpush3.bf16.msra.mxu1 %v1277_v62 }
 0x3aa   : > { %v1323_v4 = vsel %vm1275_vm3, %v1032_v63, 0  ;;  %2122 = vmatprep.subr.bf16.mxu1 %v2356_v0  ;;  %v1038_v5 = vpack.i.b16 %v1037_v2, %v1036_v15  ;;  %v1369_v6 = vsel %vm1275_vm3, %v1035_v1, 0 }
 0x3ab   : > { %2117 = vmatpush3.bf16.msra.mxu0 %v1323_v4 }
 0x3ac   : > { %2113 = vmatmul.mubr.msk.bf16.vlgmr.msra.gmra.mrb[8].mxu1 %vm1039_vm2, %v2238_v36  ;;  %2128 = vmatprep.subr.bf16.mxu0 %v2356_v0  ;;  %v1415_v7 = vsel %vm1275_vm3, %v1038_v5, 0 }
 0x3ad   : > { %2123 = vmatpush3.bf16.msra.mxu1 %v1369_v6  ;;  %2124 = vmatprep.mubr.msk.bf16.mxu1 %vm2357_vm0, %v2356_v0 }
 0x3ae   : > { %2119 = vmatmul.mubr.msk.bf16.vlgmr.msra.gmra.mrb[12].mxu0 %vm1039_vm2, %v2240_v43  ;;  %2134 = vmatprep.subr.bf16.mxu1 %v2356_v0 }
 0x3af   : > { %2129 = vmatpush3.bf16.msra.mxu0 %v1415_v7  ;;  %2130 = vmatprep.mubr.msk.bf16.mxu0 %vm2357_vm0, %v2356_v0 }
 0x3b0   : > { %2142 = vmatprep.subr.bf16.mxu0 %v2356_v0 }
 0x3be   : > { %v1232_v8 = vpop.xlane.xlu0 %1231 }
 0x3bf   : > { %v1238_v9 = vsub.f32 %v2626_v42, %v1232_v8 }
 0x3c0   : > { %v1235_v10 = vpop.xlane.xlu1 %1234 }
 0x3c1   : > { %v1242_v11 = vpack.c.bf16 %v1238_v9, %v1238_v9  ;;  %v1239_v12 = vsub.f32 %v2628_v45, %v1235_v10 }
 0x3c3   : > { %v1251_v13 = vmul.bf16 1069105081, %v1242_v11  ;;  %v1243_v16 = vpack.c.bf16 %v1239_v12, %v1239_v12 }
 0x3c5   : > { %2241 = vpow.bf16 %v1251_v13  ;;  %v1254_v17 = vmul.bf16 1069105081, %v1243_v16 }
 0x3c7   : > { %2243 = vpow.bf16 %v1254_v17 }
 0x3d0   : > { %v2242_v18 = vpop.eup %2241 }
 0x3d1   : > { %2125 = vmatmul.mubr.msk.bf16.vlgmr.msra.gmra.mrb[12].mxu1 %vm1039_vm2, %v2242_v18  ;;  %v1258_v19 = vunpack.c.l.bf16 %v2242_v18 }
 0x3d2   : > { %v2244_v20 = vpop.eup %2243  ;;  %2138 = vmatprep.mubr.msk.bf16.mxu1 %vm2357_vm0, %v2356_v0  ;;  %2135 = vmatpush3.bf16.msra.mxu1 %v2229_v22 }
 0x3d3   : > { %2131 = vmatmul.mubr.msk.bf16.vlgmr.msra.gmra.mrb[16].mxu0 %vm1039_vm2, %v2244_v20  ;;  %v1266_v42 = vsel %vm1039_vm2, %v1258_v19, 0.0  ;;  %v1259_v21 = vunpack.c.l.bf16 %v2244_v20  ;;  %2136 = vmatprep.subr.bf16.mxu1 %v2356_v0 }
 0x3d4   : > { %1267 = vadd.xlane.f32.xlu1 %v1266_v42  ;;  %2146 = vmatprep.mubr.msk.bf16.mxu0 %vm2357_vm0, %v2356_v0 }
 0x3d5   : > { %v1269_v45 = vsel %vm1039_vm2, %v1259_v21, 0.0 }
 0x3d6   : > { %1270 = vadd.xlane.f32.xlu0 %v1269_v45 }
 0x42c   : > { %v1262_v33 = vpop.xlane.xlu0 %1261 }
 0x42d   : > { %2245 = vrcp.f32 %v1262_v33 }
 0x430   : > { %v1265_v34 = vpop.xlane.xlu0 %1264 }
 0x431   : > { %2247 = vrcp.f32 %v1265_v34 }
 0x437   : > { %v2246_v37 = vpop.eup %2245 }
 0x43b   : > { %v2248_v39 = vpop.eup %2247 }
 0x461   : > { %v1268_v35 = vpop.xlane.xlu1 %1267 }
 0x462   : > { %2249 = vrcp.f32 %v1268_v35  ;;  %v2230_v35 = vld [vmem:[%s2810_s3 + $0x8] sm:$0xff]  }
 0x463   : > { %v1271_v36 = vpop.xlane.xlu0 %1270  ;;  %2137 = vmatpush3.bf16.msra.mxu1 %v2230_v35 }
 0x464   : > { %2251 = vrcp.f32 %v1271_v36  ;;  %2150 = vmatprep.subr.bf16.mxu1 %v2356_v0 }
 0x46c   : > { %v2250_v41 = vpop.eup %2249 }
 0x46e   : > { %v2252_v49 = vpop.eup %2251 }
 0x47f   : > { %v1313_v23 = vpop.f32.mrb[8].mxu1 }
 0x480   : > { %v2114_v24 = vpop.f32.mrb[9].mxu1  ;;  %v1461_v38 = vmul.f32 %v2246_v37, %v1313_v23 }
 0x481   : > { %v1316_v25 = vpop.f32.mrb[10].mxu1  ;;  %v1359_v26 = vpop.f32.mrb[12].mxu0 }
 0x482   : > { %v2115_v29 = vpop.f32.mrb[11].mxu1  ;;  %v2120_v30 = vpop.f32.mrb[13].mxu0  ;;  %v1462_v40 = vmul.f32 %v2248_v39, %v1359_v26  ;;  %v1465_v44 = vpack.c.bf16 %v1461_v38, %v1461_v38 }
 0x483   : > { %v1362_v31 = vpop.f32.mrb[14].mxu0 }
 0x484   : > { %v2121_v32 = vpop.f32.mrb[15].mxu0  ;;  %v1499_v52 = vpack.c.bf16 %v1462_v40, %v1462_v40  ;;  %v1472_v58 = vrot.slane %v1465_v44, %v2560_v27 }
 0x486   : > { %v1506_v61 = vrot.slane %v1499_v52, %v2560_v27 }
 0x4a4   : > { %v1405_v43 = vpop.f32.mrb[12].mxu1 }
 0x4a5   : > { %v1463_v46 = vmul.f32 %v2250_v41, %v1405_v43  ;;  %v2126_v48 = vpop.f32.mrb[13].mxu1 }
 0x4a6   : > { %v1408_v50 = vpop.f32.mrb[14].mxu1  ;;  %v1451_v51 = vpop.f32.mrb[16].mxu0 }
 0x4a7   : > { %v1473_v53 = vpack.c.bf16 %v1463_v46, %v1463_v46  ;;  %v1464_v54 = vmul.f32 %v2252_v49, %v1451_v51  ;;  %v2127_v55 = vpop.f32.mrb[15].mxu1  ;;  %v2132_v56 = vpop.f32.mrb[17].mxu0 }
 0x4a8   : > { %v1454_v57 = vpop.f32.mrb[18].mxu0 }
 0x4a9   : > { %v1480_v59 = vrot.slane %v1473_v53, %v2560_v27  ;;  %v1507_v60 = vpack.c.bf16 %v1464_v54, %v1464_v54  ;;  %v2133_v14 = vpop.f32.mrb[19].mxu0 }
 0x4ab   : > { %v1481_v15 = vcombine.low %v1472_v58, %v1480_v59  ;;  %v1482_v62 = vcombine.high %v1472_v58, %v1480_v59  ;;  %v1514_v63 = vrot.slane %v1507_v60, %v2560_v27  ;;  %v2026_v59 = vld [vmem:[%s2811_s4] ss:$0 sm:$0xff] }
 0x4ad   : > { %v1489_v1 = vrot.slane %v1481_v15, %v2562_v28  ;;  %v1496_v2 = vrot.slane %v1482_v62, %v2562_v28  ;;  %v1515_v4 = vcombine.low %v1506_v61, %v1514_v63  ;;  %v1516_v5 = vcombine.high %v1506_v61, %v1514_v63 }
 0x4af   : > { %v1497_v6 = vcombine.high %v1489_v1, %v2365_v47  ;;  %v1523_v7 = vrot.slane %v1515_v4, %v2562_v28  ;;  %v1530_v8 = vrot.slane %v1516_v5, %v2562_v28  ;;  %v1498_v9 = vcombine.high %v1496_v2, %v2365_v47 }
 0x4b0   : > { %v1537_v10 = vshrl.u32 %v1489_v1, 16  ;;  %v1553_v18 = vshrl.u32 %v1496_v2, 16 }
 0x4b1   : > { %v1531_v11 = vcombine.high %v1523_v7, %v2365_v47  ;;  %v1532_v12 = vcombine.high %v1530_v8, %v2365_v47  ;;  %v1535_v13 = vpack.i.b16 %v1523_v7, %v1489_v1  ;;  %v1538_v16 = vshrl.u32 %v1523_v7, 16 }
 0x4b2   : > { %v1545_v17 = vshrl.u32 %v1497_v6, 16  ;;  %v1551_v19 = vpack.i.b16 %v1530_v8, %v1496_v2  ;;  %v1554_v20 = vshrl.u32 %v1530_v8, 16  ;;  %v1561_v23 = vshrl.u32 %v1498_v9, 16  ;;  %v2231_v8 = vld [vmem:[#allocation2] sm:$0xff]  }
 0x4b3   : > { %v1539_v42 = vpack.i.b16 %v1538_v16, %v1537_v10  ;;  %v1543_v21 = vpack.i.b16 %v1531_v11, %v1497_v6  ;;  %v1546_v45 = vshrl.u32 %v1531_v11, 16  ;;  %v1559_v22 = vpack.i.b16 %v1532_v12, %v1498_v9  ;;  %2143 = vmatpush3.bf16.msra.mxu0 %v2231_v8  ;;  %v2232_v9 = vld [vmem:[#allocation2 + $0x8] sm:$0xff]  }
 0x4b4   : > { %v1555_v24 = vpack.i.b16 %v1554_v20, %v1553_v18  ;;  %v1562_v25 = vshrl.u32 %v1532_v12, 16  ;;  %v1565_v26 = vcombine.low %v1535_v13, %v1551_v19  ;;  %2144 = vmatprep.subr.bf16.mxu0 %v2356_v0  ;;  %v2234_v10 = vld [vmem:[%s2814_s7 + $0x8] sm:$0xff]   ;;  %v2031_v19 = vld [vmem:[%s2817_s10] ss:$0 sm:$0xff] }
 0x4b5   : > { %v1547_v29 = vpack.i.b16 %v1546_v45, %v1545_v17  ;;  %v1573_v30 = vcombine.low %v1543_v21, %v1559_v22  ;;  %v2030_v17 = vld [vmem:[%s2816_s9] ss:$0 sm:$0xff]  ;;  %v2235_v45 = vld [vmem:[%s2814_s7 + $0x10] sm:$0xff]   ;;  %v2236_v22 = vld [vmem:[%s2814_s7 + $0x18] sm:$0xff]  }
 0x4b6   : > { %v1563_v31 = vpack.i.b16 %v1562_v25, %v1561_v23  ;;  %v1590_v32 = vcombine.low %v1539_v42, %v1555_v24  ;;  %v1572_v33 = vrot.slane %v1565_v26, %v2560_v27  ;;  %v2032_v23 = vld [vmem:[%s2813_s6] ss:$0 sm:$0xff] }
 0x4b7   : > { %v1580_v34 = vrot.slane %v1573_v30, %v2560_v27  ;;  %2145 = vmatpush3.bf16.msra.mxu0 %v2232_v9 }
 0x4b8   : > { %v1598_v36 = vcombine.low %v1547_v29, %v1563_v31  ;;  %v1597_v38 = vrot.slane %v1590_v32, %v2560_v27 }
 0x4b9   : > { %v1581_v37 = vcombine.low %v1572_v33, %v1580_v34 }
 0x4ba   : > { %v1605_v39 = vrot.slane %v1598_v36, %v2560_v27 }
 0x4bb   : > { %v1588_v40 = vrot.slane %v1581_v37, %v2562_v28 }
 0x4bc   : > { %v1606_v41 = vcombine.low %v1597_v38, %v1605_v39 }
 0x4bd   : > { %v1589_v44 = vcombine.high %v1588_v40, %v2365_v47  ;;  %v1618_v46 = vshrl.u32 %v1588_v40, 16 }
 0x4be   : > { %v1613_v43 = vrot.slane %v1606_v41, %v2562_v28 }
 0x4bf   : > { %v1624_v53 = vshrl.u32 %v1589_v44, 16 }
 0x4c0   : > { %v1619_v48 = vshrl.u32 %v1613_v43, 16  ;;  %v1614_v49 = vcombine.high %v1613_v43, %v2365_v47  ;;  %v1617_v50 = vpack.i.b16 %v1613_v43, %v1588_v40 }
 0x4c2   : > { %v1620_v51 = vpack.i.b16 %v1619_v48, %v1618_v46  ;;  %v1623_v52 = vpack.i.b16 %v1614_v49, %v1589_v44  ;;  %v1625_v54 = vshrl.u32 %v1614_v49, 16 }
 0x4c4   : > { %1627 = vrot.lane.b32.xlu1 %v1620_v51, %s2366_s30  ;;  %1629 = vrot.lane.b32.xlu0 %v1623_v52, %s2367_s16  ;;  %v1626_v27 = vpack.i.b16 %v1625_v54, %v1624_v53  ;;  %s2012_s30 = sshll.u32 %s444_s24, 3  ;;  %v2042_v52 = vld [vmem:[%s2818_s11] ss:$0 sm:$0xff]  ;;  %s1922_s16 = scalar_lea.sflag [#allocation4], %s444_s24 }
 0x4c5   : > { %v2043_v54 = vld [vmem:[%s2819_s12] ss:$0 sm:$0xff]  ;;  %s446_s23 = scalar_lea.vmem [#allocation5], %s2012_s30  ;;  %s2289_s30 = sshll.u32 %s2369_s29, 4  ;;  %s2290_s30 = int_to_ptr.vmem [resolvable:$false] %s2289_s30 }
 0x4c6   : > { %s1935_s15 = sshll.u32 %s446_s23, 4  ;;  %s2291_s14 = scalar_lea.vmem %s2290_s30, 256  ;;  %s2766_s15 = int_to_ptr.vmem [resolvable:$true] %s1935_s15 }
 0x4c7   : > { %p2292_p2 = scmp.lt.s32.totalorder %s2766_s15, %s2290_s30 }
 0x4c8   : > { %1631 = vrot.lane.b32.xlu1 %v1626_v27, %s2368_s27  ;;  %s2285_s27 = scalar_lea.vmem %s2766_s15, 128 }
 0x4c9   : > { %p2286_p6 = scmp.ne.s32.totalorder %s2766_s15, %s2285_s27  ;;  %p2293_p3 = scmp.lt.s32.totalorder %s2291_s14, %s2285_s27 }
 0x4cb   : > { %p2287_p10 = pnand %p2286_p6, %p2839_p9  ;;  %p2294_p4 = por %p2293_p3, %p2292_p2 }
 0x4cd   : > { %p2288_p12 = pneg %p2287_p10 }
 0x4cf   : > { %p2295_p7 = pnand %p2294_p4, %p2288_p12 }
 0x536   : > { %v1628_v55 = vpop.permute.xlu1 %1627  ;;  %v1630_v56 = vpop.permute.xlu0 %1629 }
 0x537   : > { %v1635_v28 = vsel %vm1039_vm2, %v1617_v50, %v1628_v55 }
 0x538   : > { %v1638_v57 = vsel %vm1636_vm4, %v1635_v28, %v1630_v56 }
 0x53a   : > { %v1632_v47 = vpop.permute.xlu1 %1631 }
 0x53b   : > { %v1641_v58 = vsel %vm1639_vm5, %v1638_v57, %v1632_v47 }
 0x53c   : > { %2139 = vmatmul.mubr.msk.bf16.vlgmr.msra.gmra.mrb[16].mxu1 %vm477_vm1, %v1641_v58 }
 0x53d   : > { %2158 = vmatprep.mubr.msk.bf16.mxu1 %vm2357_vm0, %v2356_v0 }
 0x60f   : > { %v1701_v60 = vpop.f32.mrb[16].mxu1 }
 0x610   : > { %v1702_v14 = vadd.f32 %v2026_v59, %v1701_v60  ;;  %v2140_v61 = vpop.f32.mrb[17].mxu1 }
 0x611   : > { %v1704_v15 = vpop.f32.mrb[18].mxu1 }
 0x612   : > { %v2141_v62 = vpop.f32.mrb[19].mxu1  ;;  %v1707_v63 = vadd.f32 %v1702_v14, %v2540_v3  ;;  %v2233_v3 = vld [vmem:[%s2814_s7] sm:$0xff]  }
 0x613   : > { %2151 = vmatpush3.bf16.msra.mxu1 %v2233_v3 }
 0x614   : > { %v1710_v1 = vsel %vm477_vm1, %v1707_v63, 0.0  ;;  %2152 = vmatprep.subr.bf16.mxu1 %v2356_v0 }
 0x615   : > { %1711 = vadd.xlane.f32.xlu1 %v1710_v1 }
 0x617   : > { %2153 = vmatpush3.bf16.msra.mxu1 %v2234_v10 }
 0x618   : > { %2154 = vmatprep.subr.bf16.mxu1 %v2356_v0 }
 0x61b   : > { %2155 = vmatpush3.bf16.msra.mxu1 %v2235_v45 }
 0x61c   : > { %2156 = vmatprep.subr.bf16.mxu1 %v2356_v0  ;;  %v2036_v0 = vld [vmem:[%s2815_s8] ss:$0 sm:$0xff] }
 0x61f   : > { %2157 = vmatpush3.bf16.msra.mxu1 %v2236_v22 }
 0x6a2   : > { %v1712_v2 = vpop.xlane.xlu1 %1711 }
 0x6a3   : > { %v1714_v4 = vmul.f32 0.03125, %v1712_v2 }
 0x6a5   : > { %v1715_v5 = vsub.f32 %v1707_v63, %v1714_v4 }
 0x6a7   : > { %v1716_v6 = vmul.f32 %v1715_v5, %v1715_v5 }
 0x6a9   : > { %v1717_v7 = vsel %vm477_vm1, %v1716_v6, 0.0 }
 0x6aa   : > { %1718 = vadd.xlane.f32.xlu0 %v1717_v7 }
 0x737   : > { %v1719_v11 = vpop.xlane.xlu0 %1718 }
 0x738   : > { %v1720_v12 = vmul.f32 0.03125, %v1719_v11 }
 0x73a   : > { %v1721_v13 = vadd.f32 1e-05, %v1720_v12 }
 0x73c   : > { %2253 = vrsqrt.f32 %v1721_v13 }
 0x746   : > { %v2254_v16 = vpop.eup %2253 }
 0x747   : > { %v1723_v18 = vmul.f32 %v2254_v16, %v1715_v5 }
 0x749   : > { %v1730_v20 = vmul.f32 %v2030_v17, %v1723_v18 }
 0x74b   : > { %v1737_v42 = vadd.f32 %v2031_v19, %v1730_v20 }
 0x74d   : > { %v1738_v21 = vpack.c.bf16 %v1737_v42, %v1737_v42 }
 0x74f   : > { %2147 = vmatmul.mubr.msk.bf16.vlgmr.msra.gmra.mrb[20].mxu0 %vm477_vm1, %v1738_v21 }
 0x822   : > { %v1799_v24 = vpop.f32.mrb[20].mxu0 }
 0x823   : > { %v1800_v25 = vadd.f32 %v2032_v23, %v1799_v24  ;;  %v2148_v26 = vpop.f32.mrb[21].mxu0 }
 0x824   : > { %v1802_v29 = vpop.f32.mrb[22].mxu0 }
 0x825   : > { %v1805_v30 = vmax.f32 %v1800_v25, 0.0  ;;  %v2149_v31 = vpop.f32.mrb[23].mxu0 }
 0x827   : > { %v1806_v32 = vpack.c.bf16 %v1805_v30, %v1805_v30 }
 0x829   : > { %2159 = vmatmul.mubr.msk.bf16.vlgmr.msra.gmra.mrb[20].mxu1 %vm1846_vm6, %v1806_v32 }
 0x8fc   : > { %v1884_v33 = vpop.f32.mrb[20].mxu1 }
 0x8fd   : > { %v1885_v34 = vadd.f32 %v2036_v0, %v1884_v33  ;;  %v2160_v35 = vpop.f32.mrb[21].mxu1 }
 0x8fe   : > { %v1887_v36 = vpop.f32.mrb[22].mxu1 }
 0x8ff   : > { %v2161_v37 = vpop.f32.mrb[23].mxu1  ;;  %v1890_v38 = vadd.f32 %v1885_v34, %v1737_v42 }
 0x901   : > { %v1893_v39 = vsel %vm477_vm1, %v1890_v38, 0.0 }
 0x902   : > { %1894 = vadd.xlane.f32.xlu0 %v1893_v39 }
 0x98f   : > { %v1895_v40 = vpop.xlane.xlu0 %1894 }
 0x990   : > { %v1896_v41 = vmul.f32 0.03125, %v1895_v40 }
 0x992   : > { %v1897_v43 = vsub.f32 %v1890_v38, %v1896_v41 }
 0x994   : > { %v1898_v44 = vmul.f32 %v1897_v43, %v1897_v43 }
 0x996   : > { %v1899_v46 = vsel %vm477_vm1, %v1898_v44, 0.0 }
 0x997   : > { %1900 = vadd.xlane.f32.xlu1 %v1899_v46 }
 0xa24   : > { %v1901_v48 = vpop.xlane.xlu1 %1900 }
 0xa25   : > { %v1902_v49 = vmul.f32 0.03125, %v1901_v48 }
 0xa27   : > { %v1903_v50 = vadd.f32 1e-05, %v1902_v49 }
 0xa29   : > { %2255 = vrsqrt.f32 %v1903_v50 }
 0xa33   : > { %v2256_v51 = vpop.eup %2255 }
 0xa34   : > { %v1905_v53 = vmul.f32 %v2256_v51, %v1897_v43 }
 0xa36   : > { %v1912_v27 = vmul.f32 %v2042_v52, %v1905_v53 }
 0xa38   : > { %v1919_v55 = vadd.f32 %v2043_v54, %v1912_v27 }
 0xa3a   : > { %1920 = vst.msk [vmem:[%s446_s23] sm:$0xff] %vm477_vm1, %v1919_v55 }
 0xa3b   : > { %2298 = shalt.err (!%p2295_p7)
}
 0xa3c   : > { %s2299_s24 = scalar_lea.hbm %s2764_s0, 128  ;;  %s2303_s23 = scalar_lea.hbm %s2820_s13, 256 }
 0xa3d   : > { %p2300_p8 = scmp.ne.s32.totalorder %s2764_s0, %s2299_s24  ;;  %p2304_p1 = scmp.lt.u32.totalorder %s2764_s0, %s2820_s13 }
 0xa3e   : > { %p2305_p0 = scmp.lt.u32.totalorder %s2303_s23, %s2299_s24  ;;  %p2307_p6 = scmp.lt.u32.totalorder %s2299_s24, %s2764_s0 }
 0xa3f   : > { %p2301_p11 = pnand %p2300_p8, %p2839_p9 }
 0xa40   : > { %p2306_p5 = por %p2305_p0, %p2304_p1 }
 0xa41   : > { %p2302_p13 = pneg %p2301_p11 }
 0xa42   : > { %p2308_p10 = por %p2307_p6, %p2306_p5 }
 0xa44   : > { %p2309_p12 = pnand %p2308_p10, %p2302_p13 }
 0xa46   : > { %2312 = shalt.err (!%p2309_p12)
}
 0xa47   : > { %2166 = dma.vmem_to_hbm [thread:$0]  (%p2839_p9), %s2766_s15, 128, %s2764_s0, %s1922_s16  }
 0xa48 PF: > { %p2178_p2 = scmp.ge.s32.totalorder %s2351_s28, 2  ;;  %s1947_s27 = sand.u32 1, %s2339_s25  }
 0xa49   : > { %p2840_p3 = scmp.ne.s32.totalorder %s2832_s19, 0  ;;  %s1948_s29 = scalar_lea.sflag [#allocation4], %s1947_s27 }
 0xa4b   : > { %p2173_p4 = pnand %p2178_p2, %p2840_p3 }
 0xa4d   : > { %2334 = dma.done.wait (!%p2173_p4), %s1948_s29, 128  }
 0xa4e   : > { %2336 = vsyncadd (!%p2173_p4), %s1948_s29, 4294967168  ;;  %s2841_s28 = sld [smem:[#allocation9_spill]]  ;;  %s2842_s30 = sld [smem:[#allocation8_spill]] }
 0xa4f   : > { %s2843_s27 = sld [smem:[#allocation10_spill]]  ;;  %s2844_s25 = smov %s2343_s26 }
 0xa54   : > { %p24_p7 = scmp.ge.s32.totalorder %s2841_s28, 4   ;;  %s2845_s26 = smov %s2842_s30 }
 0xa56   :  { %26 = sbr.rel (!%p24_p7) target bundleno = 6 (0x6), region = 112 }
 0xa5d   :  { %1953 = vsyncpa [#allocation3], 1 }
 0xa5e   :  { %1955 = vsyncpa [#allocation3 + $0x1], 1 }
 0xa5f   :  { %1956 = vsyncpa [#allocation4], 1 }
 0xa60   :  { %1958 = vsyncpa [#allocation4 + $0x1], 1 }

</bundles_post_ra>
